<compile_context>
chip_gen: v5e
topology: v5e:2x2
jax: 0.10.0
libtpu: 0.0.40
codegen_flags: <defaults>
</compile_context>

<pallas_src>
import functools

import jax
import jax.numpy as jnp
from jax.experimental import pallas as pl
from jax.experimental.pallas import tpu as pltpu

LANE = 128
SUBLANE = 8


def _round_up(n, m):
    return (n + m - 1) // m * m


# ----------------------------------------------------------------------------
# Fused kernel: Linear(+bias) -> ReLU -> Linear -> ReLU -> Dropout(eval) -> Linear
# Operands: x tile bf16, weights bf16, bias f32. All dots accumulate in f32.
# ----------------------------------------------------------------------------
def _classifier_kernel(x_ref, w1_ref, b1_ref, w2_ref, w3_ref, o_ref):
    h = jnp.dot(x_ref[...], w1_ref[...], preferred_element_type=jnp.float32)
    h = jnp.maximum(h + b1_ref[...], 0.0)                       # bias + ReLU in f32
    h = jnp.dot(h.astype(jnp.bfloat16), w2_ref[...],
                preferred_element_type=jnp.float32)
    h = jnp.maximum(h, 0.0)                                     # ReLU in f32
    # Dropout(0.5) in eval mode is identity.
    o_ref[...] = jnp.dot(h.astype(jnp.bfloat16), w3_ref[...],
                         preferred_element_type=jnp.float32).astype(o_ref.dtype)


# ----------------------------------------------------------------------------
# Wrapper: batch-tiled pallas_call with resident weights
# ----------------------------------------------------------------------------
def classifier_forward(params, x, *, out_label, block_b=1024):
    """x: (B, latent_dim) f32/bf16 -> (B, out_label) f32."""
    w1, b1, w2, w3 = params["w1"], params["b1"], params["w2"], params["w3_padded"]
    B, latent = x.shape
    n_pad = w3.shape[1]                       # 128-lane-padded label count

    # Tile size: multiple of 8 sublanes, capped at block_b (default 1024 keeps
    # the double-buffered working set far under v7x's 64 MiB VMEM even at
    # latent_dim=1024; raise block_b on v5e/v6e for bigger batches if desired).
    tb = min(block_b, _round_up(B, SUBLANE))
    b_pad = _round_up(B, tb)

    xb = x.astype(jnp.bfloat16)
    if b_pad != B:
        xb = jnp.pad(xb, ((0, b_pad - B), (0, 0)))

    grid = (b_pad // tb,)

    flops = 2 * b_pad * (latent * 256 + 256 * 128 + 128 * n_pad)
    bytes_accessed = (
        b_pad * latent * 2                                    # x (bf16)
        + (w1.size + w2.size + w3.size) * 2 + b1.size * 4     # params
        + b_pad * n_pad * 4                                   # out (f32)
    )
    # VMEM working set (double-buffered x/out tiles + resident weights + f32
    # intermediates), with 2x headroom, clamped to stay under v7x's 64 MiB.
    vmem_bytes = (
        2 * tb * latent * 2
        + 2 * tb * n_pad * 4
        + 2 * ((w1.size + w2.size + w3.size) * 2 + b1.size * 4)
        + tb * 256 * 4 + tb * 128 * 4
    )
    vmem_limit = max(32 * 1024 * 1024, min(2 * int(vmem_bytes), 60 * 1024 * 1024))

    out_padded = pl.pallas_call(
        _classifier_kernel,
        out_shape=jax.ShapeDtypeStruct((b_pad, n_pad), jnp.float32),
        grid=grid,
        in_specs=[
            pl.BlockSpec((tb, latent), lambda i: (i, 0)),      # streamed x tile
            pl.BlockSpec((latent, 256), lambda i: (0, 0)),     # resident weights
            pl.BlockSpec((1, 256), lambda i: (0, 0)),
            pl.BlockSpec((256, 128), lambda i: (0, 0)),
            pl.BlockSpec((128, n_pad), lambda i: (0, 0)),
        ],
        out_specs=pl.BlockSpec((tb, n_pad), lambda i: (i, 0)),
        compiler_params=pltpu.CompilerParams(
            dimension_semantics=("parallel",),                 # v7x megacore
            vmem_limit_bytes=vmem_limit,
        ),
        cost_estimate=pl.CostEstimate(
            flops=int(flops), transcendentals=0, bytes_accessed=int(bytes_accessed)
        ),
    )(xb, w1, b1, w2, w3)

    # Trim row padding and the lane-dense label padding.
    # (At production batch sizes, consider keeping the (B, 128) slab as the
    #  contract or fusing the consumer (softmax/argmax/loss) into the epilogue
    #  to avoid an extra HBM round-trip for this slice.)
    return out_padded[:B, :out_label]


# ----------------------------------------------------------------------------
# Parameter construction (deterministic; weights pre-transposed to (in, out),
# stored bf16 for the MXU; f32 masters kept for the reference check).
# ----------------------------------------------------------------------------
def make_params(key, latent_dim, out_label):
    k1, k2, k3, k4 = jax.random.split(key, 4)

    def _w(k, fan_in, fan_out):
        return (jax.random.normal(k, (fan_in, fan_out), jnp.float32)
                * (1.0 / jnp.sqrt(jnp.float32(fan_in))))

    w1 = _w(k1, latent_dim, 256)
    b1 = jax.random.normal(k2, (1, 256), jnp.float32) * 0.1
    w2 = _w(k3, 256, 128)                       # bias=False
    w3 = _w(k4, 128, out_label)                 # bias=False
    n_pad = max(LANE, _round_up(out_label, LANE))
    w3_padded = jnp.zeros((128, n_pad), jnp.float32).at[:, :out_label].set(w3)
    return {
        "w1": w1.astype(jnp.bfloat16),
        "b1": b1,                               # bias stays f32
        "w2": w2.astype(jnp.bfloat16),
        "w3_padded": w3_padded.astype(jnp.bfloat16),
        # f32 masters, only for the pure-JAX reference check
        "w1_f32": w1, "w2_f32": w2, "w3_f32": w3,
    }


# ----------------------------------------------------------------------------
# Pure-JAX f32 reference (eval-mode semantics) for a tolerance check
# ----------------------------------------------------------------------------
def classifier_ref(params, x):
    h = jnp.maximum(x @ params["w1_f32"] + params["b1"], 0.0)
    h = jnp.maximum(h @ params["w2_f32"], 0.0)
    return h @ params["w3_f32"]


# ----------------------------------------------------------------------------
if __name__ == "__main__":
    B = 10             # ragged on purpose: exercises batch padding
    LATENT = 256       # small stand-in for latent_dim=1024 (128-aligned)
    OUT = 10           # out_label

    key = jax.random.PRNGKey(0)
    k_params, k_x = jax.random.split(key, 2)

    params = make_params(k_params, LATENT, OUT)
    x = jax.random.normal(k_x, (B, LATENT), jnp.float32)

    # block_b=8 at these tiny shapes so the batch grid (2 steps) and the
    # resident-weight index_maps actually get exercised; production default is 1024.
    fwd = jax.jit(functools.partial(classifier_forward, out_label=OUT, block_b=8))
    y = fwd(params, x)
    jax.block_until_ready(y)

    assert y.shape == (B, OUT)
    y_ref = classifier_ref(params, x)
    # bf16 MXU operands (f32 accumulation) vs f32 reference -> loose tolerance.
    assert jnp.allclose(y, y_ref, atol=5e-2, rtol=5e-2), "mismatch vs JAX reference"

    print("KERNEL_OK")
</pallas_src>

<mosaic_0001>
module attributes {stable_mosaic.version = 11 : i64} {
  func.func @_classifier_kernel(%arg0: i32, %arg1: memref<8x256xbf16, #tpu.memory_space<vmem>>, %arg2: memref<256x256xbf16, #tpu.memory_space<vmem>>, %arg3: memref<1x256xf32, #tpu.memory_space<vmem>>, %arg4: memref<256x128xbf16, #tpu.memory_space<vmem>>, %arg5: memref<128x128xbf16, #tpu.memory_space<vmem>>, %arg6: memref<8x128xf32, #tpu.memory_space<vmem>>) attributes {dimension_semantics = [#tpu.dimension_semantics<parallel>], iteration_bounds = array<i64: 2>, scalar_prefetch = 0 : i64, scratch_operands = 0 : i64, tpu.core_type = #tpu.core_type<tc>, window_params = [{transform_indices = @transform_0, window_bounds = array<i64: 8, 256>}, {pipeline_mode = #tpu.pipeline_mode<synchronous>, transform_indices = @transform_1, window_bounds = array<i64: 256, 256>}, {pipeline_mode = #tpu.pipeline_mode<synchronous>, transform_indices = @transform_2, window_bounds = array<i64: 1, 256>}, {pipeline_mode = #tpu.pipeline_mode<synchronous>, transform_indices = @transform_3, window_bounds = array<i64: 256, 128>}, {pipeline_mode = #tpu.pipeline_mode<synchronous>, transform_indices = @transform_4, window_bounds = array<i64: 128, 128>}, {transform_indices = @transform_5, window_bounds = array<i64: 8, 128>}]} {
    %c0 = arith.constant 0 : index
    %c0_0 = arith.constant 0 : index
    %0 = vector.load %arg1[%c0, %c0_0] : memref<8x256xbf16, #tpu.memory_space<vmem>>, vector<8x256xbf16>
    %c0_1 = arith.constant 0 : index
    %c0_2 = arith.constant 0 : index
    %1 = vector.load %arg2[%c0_1, %c0_2] : memref<256x256xbf16, #tpu.memory_space<vmem>>, vector<256x256xbf16>
    %cst = arith.constant dense<0.000000e+00> : vector<8x256xf32>
    %2 = tpu.matmul %0, %1, %cst {dimension_numbers = #tpu.dot_dimension_numbers<[1], [0], [0], [1], [0, 0, 1, 1], [], []>} : vector<8x256xbf16>, vector<256x256xbf16>, vector<8x256xf32> -> vector<8x256xf32>
    %c0_3 = arith.constant 0 : index
    %c0_4 = arith.constant 0 : index
    %3 = vector.load %arg3[%c0_3, %c0_4] : memref<1x256xf32, #tpu.memory_space<vmem>>, vector<1x256xf32>
    %4 = vector.broadcast %3 : vector<1x256xf32> to vector<8x256xf32>
    %5 = arith.addf %2, %4 : vector<8x256xf32>
    %cst_5 = arith.constant 0.000000e+00 : f32
    %6 = vector.broadcast %cst_5 : f32 to vector<8x256xf32>
    %7 = arith.maximumf %5, %6 : vector<8x256xf32>
    %8 = arith.truncf %7 : vector<8x256xf32> to vector<8x256xbf16>
    %c0_6 = arith.constant 0 : index
    %c0_7 = arith.constant 0 : index
    %9 = vector.load %arg4[%c0_6, %c0_7] : memref<256x128xbf16, #tpu.memory_space<vmem>>, vector<256x128xbf16>
    %cst_8 = arith.constant dense<0.000000e+00> : vector<8x128xf32>
    %10 = tpu.matmul %8, %9, %cst_8 {dimension_numbers = #tpu.dot_dimension_numbers<[1], [0], [0], [1], [0, 0, 1, 1], [], []>} : vector<8x256xbf16>, vector<256x128xbf16>, vector<8x128xf32> -> vector<8x128xf32>
    %cst_9 = arith.constant 0.000000e+00 : f32
    %11 = vector.broadcast %cst_9 : f32 to vector<8x128xf32>
    %12 = arith.maximumf %10, %11 : vector<8x128xf32>
    %13 = arith.truncf %12 : vector<8x128xf32> to vector<8x128xbf16>
    %c0_10 = arith.constant 0 : index
    %c0_11 = arith.constant 0 : index
    %14 = vector.load %arg5[%c0_10, %c0_11] : memref<128x128xbf16, #tpu.memory_space<vmem>>, vector<128x128xbf16>
    %cst_12 = arith.constant dense<0.000000e+00> : vector<8x128xf32>
    %15 = tpu.matmul %13, %14, %cst_12 {dimension_numbers = #tpu.dot_dimension_numbers<[1], [0], [0], [1], [0, 0, 1, 1], [], []>} : vector<8x128xbf16>, vector<128x128xbf16>, vector<8x128xf32> -> vector<8x128xf32>
    %c0_13 = arith.constant 0 : index
    %c0_14 = arith.constant 0 : index
    %16 = vector.load %arg6[%c0_13, %c0_14] : memref<8x128xf32, #tpu.memory_space<vmem>>, vector<8x128xf32>
    tpu.vector_store %arg6[%c0_13, %c0_14], %15 {strides = array<i32>} : memref<8x128xf32, #tpu.memory_space<vmem>>, vector<8x128xf32>,
    return
  }
  func.func @transform_0(%arg0: i32) -> (i32, i32) {
    %c0_i32 = arith.constant 0 : i32
    %c0_i32_0 = arith.constant 0 : i32
    return %arg0, %c0_i32 : i32, i32
  }
  func.func @transform_1(%arg0: i32) -> (i32, i32) {
    %c0_i32 = arith.constant 0 : i32
    %c0_i32_0 = arith.constant 0 : i32
    %c0_i32_1 = arith.constant 0 : i32
    return %c0_i32, %c0_i32_0 : i32, i32
  }
  func.func @transform_2(%arg0: i32) -> (i32, i32) {
    %c0_i32 = arith.constant 0 : i32
    %c0_i32_0 = arith.constant 0 : i32
    %c0_i32_1 = arith.constant 0 : i32
    return %c0_i32, %c0_i32_0 : i32, i32
  }
  func.func @transform_3(%arg0: i32) -> (i32, i32) {
    %c0_i32 = arith.constant 0 : i32
    %c0_i32_0 = arith.constant 0 : i32
    %c0_i32_1 = arith.constant 0 : i32
    return %c0_i32, %c0_i32_0 : i32, i32
  }
  func.func @transform_4(%arg0: i32) -> (i32, i32) {
    %c0_i32 = arith.constant 0 : i32
    %c0_i32_0 = arith.constant 0 : i32
    %c0_i32_1 = arith.constant 0 : i32
    return %c0_i32, %c0_i32_0 : i32, i32
  }
  func.func @transform_5(%arg0: i32) -> (i32, i32) {
    %c0_i32 = arith.constant 0 : i32
    %c0_i32_0 = arith.constant 0 : i32
    return %arg0, %c0_i32 : i32, i32
  }
}

</mosaic_0001>

<bundles_post_ra>
// kernel: classifier_forward.1
= control target key start
LH: loop header
LB: loop body
LE: loop exit
PB: predicated region body
PF: predicated region fallthrough
CT: control target
= control target key end

     0   :  { %10 = vsyncpa [#allocation3], 0  ;;  %s1520_s0 = inlined_call_operand.vmem [shape: bf16[16,256], index: 0, kind: input, shape index: {}]   ;;  %s1521_s1 = inlined_call_operand.hbm [shape: bf16[256,256], index: 1, kind: input, shape index: {}]   ;;  %s1522_s2 = inlined_call_operand.vmem [shape: f32[1,256], index: 2, kind: input, shape index: {}]   ;;  %s1523_s3 = inlined_call_operand.hbm [shape: bf16[256,128], index: 3, kind: input, shape index: {}]   ;;  %s1524_s4 = inlined_call_operand.vmem [shape: bf16[128,128], index: 4, kind: input, shape index: {}]   ;;  %s1525_s5 = inlined_call_operand.hbm [shape: f32[16,128], index: 5, kind: output, shape index: {}]  }
   0x1   :  { %11 = vsyncpa [#allocation6], 0 }
   0x2   :  { %12 = vsyncpa [#allocation4], 0 }
   0x3   :  { %14 = vsyncpa [#allocation4 + $0x1], 0  ;;  %s1378_s18 = smov 0   ;;  %s1380_s19 = smov 0  }
   0x4   :  { %s1382_s20 = smov 0   ;;  %s1384_s21 = smov 0  }
   0x5 LB: > { %s1399_s22 = sadd.s32 4294967295, %s1340_s21   ;;  %s850_s23 = sadd.s32 4294967294, %s1340_s21   ;;  %s1340_s21 = sphi %s1384_s21, %s1532_s21   ;;  %s1336_s20 = sphi %s1382_s20, %s1531_s20   ;;  %s1332_s19 = sphi %s1380_s19, %s1530_s19   ;;  %s1328_s18 = sphi %s1378_s18, %s1529_s18  }
   0x6   : > { %s1403_s24 = sadd.s32 1, %s1340_s21   ;;  %s137_s25 = sadd.s32 1, %s1336_s20 }
   0x7   : > { %s134_s26 = ssub.s32 %s1340_s21, %s1403_s24  ;;  %p147_p0 = scmp.ne.s32.totalorder %s1336_s20, %s1332_s19 }
   0x8   : > { %p135_p1 = scmp.eq.s32.totalorder %s134_s26, 0  ;;  %p148_p2 = scmp.eq.s32.totalorder %s1399_s22, 1 }
   0x9   : > { %p153_p3 = scmp.ne.s32.totalorder %s1332_s19, %s1328_s18  ;;  %p154_p4 = scmp.eq.s32.totalorder %s850_s23, 1 }
   0xa   : > { %s1414_s27 = scalar_select %p135_p1, %s1336_s20, %s137_s25  }
   0xb   : > { %p1416_p5 = por %p148_p2, %p147_p0  ;;  %p1420_p6 = por %p154_p4, %p153_p3 }
   0xc   : > { %p851_p7 = scmp.ge.s32.totalorder %s1340_s21, 1  ;;  %p161_p8 = scmp.lt.s32.totalorder %s1340_s21, 3 }
   0xd   : > { %p1167_p9 = scmp.eq.s32.totalorder %s1399_s22, 0  ;;  %s172_s8 = sshll.u32 %s1521_s1, 4  ;;  %s173_s8 = int_to_ptr.hbm [resolvable:$true] %s172_s8 }
   0xe   : > { %p1427_p10 = pnand %p851_p7, %p161_p8  ;;  %s1342_s9 = smov [#allocation2]  }
   0xf   : > { %s174_s10 = sshll.u32 %s1342_s9, 4  ;;  %s189_s13 = sshll.u32 %s1523_s3, 4  ;;  %s175_s10 = int_to_ptr.vmem [resolvable:$true] %s174_s10  ;;  %s190_s13 = int_to_ptr.hbm [resolvable:$true] %s189_s13 }
  0x10   : > { %p1156_p11 = pneg %p1427_p10  ;;  %s1343_s14 = smov 128  }
  0x11   : > { %s1344_s15 = smov 8   ;;  %s1345_s16 = smov [#allocation5]  }
  0x12   : > { %p1157_p12 = pnand %p1167_p9, %p1156_p11  ;;  %s191_s17 = sshll.u32 %s1345_s16, 4  ;;  %s192_s17 = int_to_ptr.vmem [resolvable:$true] %s191_s17 }
  0x13   : > { %s1346_s23 = smov 64   ;;  %s1347_s25 = smov 4  }
  0x14   : > { %1159 = dma.hbm_to_vmem [thread:$0]  (!%p1157_p12), %s173_s8, 4096, %s175_s10, [#allocation3], %s1343_s14, %s1343_s14, %s1344_s15  }
  0x15   : > { %1162 = dma.hbm_to_vmem [thread:$0]  (!%p1157_p12), %s190_s13, 2048, %s192_s17, [#allocation6], %s1346_s23, %s1346_s23, %s1347_s25  }
  0x16   : > { %218 = sbr.rel (%p1427_p10) target bundleno = 479 (0x1df), region = 40 }
  0x1b   : > { %1315 = dma.done.wait (%p1167_p9), [#allocation3], 4096  }
  0x1c   : > { %1317 = vsyncadd (%p1167_p9), [#allocation3], 4294963200 }
  0x1d   : > { %1319 = dma.done.wait (%p1167_p9), [#allocation6], 2048  }
  0x1e   : > { %1321 = vsyncadd (%p1167_p9), [#allocation6], 4294965248  ;;  %p252_p13 = scmp.lt.s32.totalorder %s1399_s22, 1  ;;  %v919_v0 = vld [vmem:[#allocation2 + $0x70] sm:$0xf]  ;;  %s249_s11 = sand.u32 1, %s1332_s19  }
  0x1f   : > { %v1105_v1 = vld [vmem:[#allocation2 + $0x74] sm:$0xf0]  ;;  %v983_v2 = vld [vmem:[#allocation2 + $0xf0] sm:$0xf]  ;;  %v1104_v5 = vld [vmem:[#allocation2 + $0x74] sm:$0xf] }
  0x20   : > { %v920_v3 = vor.u32 %v1105_v1, %v919_v0  ;;  %v1121_v4 = vld [vmem:[#allocation2 + $0xf4] sm:$0xf0]  ;;  %v921_v6 = vld [vmem:[#allocation2 + $0x78] sm:$0xf0]  ;;  %v1120_v9 = vld [vmem:[#allocation2 + $0xf4] sm:$0xf] }
  0x21   : > { %v984_v7 = vor.u32 %v1121_v4, %v983_v2  ;;  %v924_v8 = vor.u32 %v1104_v5, %v921_v6  ;;  %v985_v10 = vld [vmem:[#allocation2 + $0xf8] sm:$0xf0]  ;;  %v911_v11 = vld [vmem:[#allocation2 + $0x60] sm:$0xf]  ;;  %v1103_v13 = vld [vmem:[#allocation2 + $0x64] sm:$0xf0] }
  0x22   : > { %463 = vmatpush.bf16.msra.mxu0 %v920_v3  ;;  %v988_v12 = vor.u32 %v1120_v9, %v985_v10  ;;  %v975_v14 = vld [vmem:[#allocation2 + $0xe0] sm:$0xf]  ;;  %v1119_v15 = vld [vmem:[#allocation2 + $0xe4] sm:$0xf0]  ;;  %v912_v16 = vor.u32 %v1103_v13, %v911_v11  ;;  %v1102_v18 = vld [vmem:[#allocation2 + $0x64] sm:$0xf] }
  0x23   : > { %476 = vmatpush.bf16.msra.mxu1 %v984_v7  ;;  %489 = vmatpush.bf16.msra.mxu2 %v924_v8  ;;  %v976_v17 = vor.u32 %v1119_v15, %v975_v14  ;;  %v913_v19 = vld [vmem:[#allocation2 + $0x68] sm:$0xf0]  ;;  %v1118_v20 = vld [vmem:[#allocation2 + $0xe4] sm:$0xf]  ;;  %v903_v23 = vld [vmem:[#allocation2 + $0x50] sm:$0xf] }
  0x24   : > { %502 = vmatpush.bf16.msra.mxu3 %v988_v12  ;;  %v916_v21 = vor.u32 %v1102_v18, %v913_v19  ;;  %v977_v22 = vld [vmem:[#allocation2 + $0xe8] sm:$0xf0]  ;;  %v1101_v24 = vld [vmem:[#allocation2 + $0x54] sm:$0xf0]  ;;  %v967_v26 = vld [vmem:[#allocation2 + $0xd0] sm:$0xf] }
  0x25   : > { %v980_v25 = vor.u32 %v1118_v20, %v977_v22  ;;  %v1117_v27 = vld [vmem:[#allocation2 + $0xd4] sm:$0xf0]  ;;  %v1100_v28 = vld [vmem:[#allocation2 + $0x54] sm:$0xf]  ;;  %v904_v29 = vor.u32 %v1101_v24, %v903_v23  ;;  %v905_v30 = vld [vmem:[#allocation2 + $0x58] sm:$0xf0] }
  0x26   : > { %464 = vmatpush.bf16.msra.mxu0 %v912_v16  ;;  %v1116_v31 = vld [vmem:[#allocation2 + $0xd4] sm:$0xf]  ;;  %v969_v32 = vld [vmem:[#allocation2 + $0xd8] sm:$0xf0]  ;;  %v968_v33 = vor.u32 %v1117_v27, %v967_v26  ;;  %v908_v34 = vor.u32 %v1100_v28, %v905_v30  ;;  %v895_v35 = vld [vmem:[#allocation2 + $0x40] sm:$0xf] }
  0x27   : > { %477 = vmatpush.bf16.msra.mxu1 %v976_v17  ;;  %490 = vmatpush.bf16.msra.mxu2 %v916_v21  ;;  %v1099_v36 = vld [vmem:[#allocation2 + $0x44] sm:$0xf0]  ;;  %v959_v37 = vld [vmem:[#allocation2 + $0xc0] sm:$0xf]  ;;  %v972_v38 = vor.u32 %v1116_v31, %v969_v32  ;;  %v1098_v40 = vld [vmem:[#allocation2 + $0x44] sm:$0xf] }
  0x28   : > { %503 = vmatpush.bf16.msra.mxu3 %v980_v25  ;;  %v1115_v39 = vld [vmem:[#allocation2 + $0xc4] sm:$0xf0]  ;;  %v897_v41 = vld [vmem:[#allocation2 + $0x48] sm:$0xf0]  ;;  %v1114_v42 = vld [vmem:[#allocation2 + $0xc4] sm:$0xf]  ;;  %v896_v44 = vor.u32 %v1099_v36, %v895_v35 }
  0x29   : > { %v961_v43 = vld [vmem:[#allocation2 + $0xc8] sm:$0xf0]  ;;  %s1455_s26 = scalar_select %p252_p13, %s1399_s22, 1  ;;  %v960_v45 = vor.u32 %v1115_v39, %v959_v37  ;;  %v900_v46 = vor.u32 %v1098_v40, %v897_v41  ;;  %v887_v47 = vld [vmem:[#allocation2 + $0x30] sm:$0xf]  ;;  %v1129_v35 = vld [vmem:[#allocation5 + $0x38] sm:$0xff] }
  0x2a   : > { %465 = vmatpush.bf16.msra.mxu0 %v904_v29  ;;  %v1097_v48 = vld [vmem:[#allocation2 + $0x34] sm:$0xf0]  ;;  %v951_v49 = vld [vmem:[#allocation2 + $0xb0] sm:$0xf]  ;;  %v964_v50 = vor.u32 %v1114_v42, %v961_v43  ;;  %v1096_v52 = vld [vmem:[#allocation2 + $0x34] sm:$0xf] }
  0x2b   : > { %478 = vmatpush.bf16.msra.mxu1 %v968_v33  ;;  %491 = vmatpush.bf16.msra.mxu2 %v908_v34  ;;  %v1113_v51 = vld [vmem:[#allocation2 + $0xb4] sm:$0xf0]  ;;  %v889_v53 = vld [vmem:[#allocation2 + $0x38] sm:$0xf0]  ;;  %v1112_v54 = vld [vmem:[#allocation2 + $0xb4] sm:$0xf]  ;;  %v888_v56 = vor.u32 %v1097_v48, %v887_v47 }
  0x2c   : > { %504 = vmatpush.bf16.msra.mxu3 %v972_v38  ;;  %v953_v55 = vld [vmem:[#allocation2 + $0xb8] sm:$0xf0]  ;;  %s1089_s30 = sshll.u32 %s1455_s26, 3  ;;  %v952_v57 = vor.u32 %v1113_v51, %v951_v49  ;;  %v892_v58 = vor.u32 %v1096_v52, %v889_v53  ;;  %v879_v59 = vld [vmem:[#allocation2 + $0x20] sm:$0xf]  ;;  %v1128_v39 = vld [vmem:[#allocation5 + $0x30] sm:$0xff] }
  0x2d   : > { %v1095_v60 = vld [vmem:[#allocation2 + $0x24] sm:$0xf0]  ;;  %v943_v61 = vld [vmem:[#allocation2 + $0xa0] sm:$0xf]  ;;  %v956_v62 = vor.u32 %v1112_v54, %v953_v55  ;;  %v1094_v0 = vld [vmem:[#allocation2 + $0x24] sm:$0xf]  ;;  %s256_s8 = scalar_lea.vmem %s1520_s0, %s1089_s30 }
  0x2e   : > { %466 = vmatpush.bf16.msra.mxu0 %v896_v44  ;;  %v1111_v63 = vld [vmem:[#allocation2 + $0xa4] sm:$0xf0]  ;;  %v881_v1 = vld [vmem:[#allocation2 + $0x28] sm:$0xf0]  ;;  %v1110_v2 = vld [vmem:[#allocation2 + $0xa4] sm:$0xf]  ;;  %v880_v4 = vor.u32 %v1095_v60, %v879_v59 }
  0x2f   : > { %479 = vmatpush.bf16.msra.mxu1 %v960_v45  ;;  %492 = vmatpush.bf16.msra.mxu2 %v900_v46  ;;  %v945_v3 = vld [vmem:[#allocation2 + $0xa8] sm:$0xf0]  ;;  %v944_v5 = vor.u32 %v1111_v63, %v943_v61  ;;  %v884_v6 = vor.u32 %v1094_v0, %v881_v1  ;;  %v871_v7 = vld [vmem:[#allocation2 + $0x10] sm:$0xf]  ;;  %v1093_v8 = vld [vmem:[#allocation2 + $0x14] sm:$0xf0] }
  0x30   : > { %505 = vmatpush.bf16.msra.mxu3 %v964_v50  ;;  %v935_v9 = vld [vmem:[#allocation2 + $0x90] sm:$0xf]  ;;  %v948_v10 = vor.u32 %v1110_v2, %v945_v3  ;;  %v1109_v11 = vld [vmem:[#allocation2 + $0x94] sm:$0xf0]  ;;  %v1092_v12 = vld [vmem:[#allocation2 + $0x14] sm:$0xf]  ;;  %v872_v16 = vor.u32 %v1093_v8, %v871_v7 }
  0x31   : > { %v873_v13 = vld [vmem:[#allocation2 + $0x18] sm:$0xf0]  ;;  %v1108_v14 = vld [vmem:[#allocation2 + $0x94] sm:$0xf]  ;;  %v257_v17 = vld [vmem:[%s256_s8] sm:$0xff]  ;;  %v936_v18 = vor.u32 %v1109_v11, %v935_v9  ;;  %s1086_s12 = sshll.u32 %s1399_s22, 3 }
  0x32   : > { %467 = vmatpush.bf16.msra.mxu0 %v888_v56  ;;  %v937_v15 = vld [vmem:[#allocation2 + $0x98] sm:$0xf0]  ;;  %v876_v19 = vor.u32 %v1092_v12, %v873_v13  ;;  %v863_v20 = vld [vmem:[#allocation2] sm:$0xf]  ;;  %v1091_v21 = vld [vmem:[#allocation2 + $0x4] sm:$0xf0]  ;;  %v297_v29 = vunpack.c.l.b16 %v257_v17  ;;  %v298_v31 = vunpack.c.h.b16 %v257_v17  ;;  %s764_s16 = scalar_lea.hbm %s1525_s5, %s1086_s12 }
  0x33   : > { %480 = vmatpush.bf16.msra.mxu1 %v952_v57  ;;  %493 = vmatpush.bf16.msra.mxu2 %v892_v58  ;;  %v927_v22 = vld [vmem:[#allocation2 + $0x80] sm:$0xf]  ;;  %v940_v23 = vor.u32 %v1108_v14, %v937_v15  ;;  %v1107_v24 = vld [vmem:[#allocation2 + $0x84] sm:$0xf0]  ;;  %v1090_v25 = vld [vmem:[#allocation2 + $0x4] sm:$0xf]  ;;  %v864_v30 = vor.u32 %v1091_v21, %v863_v20 }
  0x34   : > { %506 = vmatpush.bf16.msra.mxu3 %v956_v62  ;;  %v865_v26 = vld [vmem:[#allocation2 + $0x8] sm:$0xf0]  ;;  %v1106_v27 = vld [vmem:[#allocation2 + $0x84] sm:$0xf]  ;;  %v928_v32 = vor.u32 %v1107_v24, %v927_v22  ;;  %v299_v36 = vpack.c.b16 %v297_v29, %v297_v29  ;;  %v1137_v37 = vld [vmem:[#allocation5 + $0x78] sm:$0xff]  ;;  %v300_v38 = vpack.c.b16 %v298_v31, %v298_v31  ;;  %s858_s13 = sshll.u32 %s249_s11, 3 }
  0x35   : > { %v929_v28 = vld [vmem:[#allocation2 + $0x88] sm:$0xf0]  ;;  %v868_v33 = vor.u32 %v1090_v25, %v865_v26  ;;  %v1136_v40 = vld [vmem:[#allocation5 + $0x70] sm:$0xff]  ;;  %v1126_v43 = vld [vmem:[#allocation5 + $0x20] sm:$0xff]  ;;  %s251_s17 = scalar_lea.vmem [#allocation7], %s858_s13  ;;  %s768_s25 = sshll.u32 %s764_s16, 4  ;;  %s769_s25 = int_to_ptr.hbm [resolvable:$true] %s768_s25 }
  0x36   : > { %468 = vmatpush.bf16.msra.mxu0 %v880_v4  ;;  %v932_v34 = vor.u32 %v1106_v27, %v929_v28  ;;  %v1127_v41 = vld [vmem:[#allocation5 + $0x28] sm:$0xff]  ;;  %v1134_v44 = vld [vmem:[#allocation5 + $0x60] sm:$0xff]  ;;  %v1125_v45 = vld [vmem:[#allocation5 + $0x18] sm:$0xff]  ;;  %s766_s23 = sshll.u32 %s251_s17, 4  ;;  %s754_s26 = scalar_lea.sflag [#allocation4], %s249_s11  ;;  %s767_s23 = int_to_ptr.vmem [resolvable:$true] %s766_s23 }
  0x37   : > { %481 = vmatpush.bf16.msra.mxu1 %v944_v5  ;;  %494 = vmatpush.bf16.msra.mxu2 %v884_v6  ;;  %v1135_v42 = vld [vmem:[#allocation5 + $0x68] sm:$0xff]  ;;  %v1124_v46 = vld [vmem:[#allocation5 + $0x10] sm:$0xff]  ;;  %v1133_v47 = vld [vmem:[#allocation5 + $0x58] sm:$0xff]  ;;  %s1284_s30 = sshra.s32 %s769_s25, 4  ;;  %s1290_s8 = scalar_lea.hbm %s1525_s5, 16  ;;  %s1285_s30 = int_to_ptr.hbm [resolvable:$true] %s1284_s30 }
  0x38   : > { %507 = vmatpush.bf16.msra.mxu3 %v948_v10  ;;  %v1123_v48 = vld [vmem:[#allocation5 + $0x8] sm:$0xff]  ;;  %v1132_v49 = vld [vmem:[#allocation5 + $0x50] sm:$0xff]  ;;  %v1122_v50 = vld [vmem:[#allocation5] sm:$0xff]  ;;  %s1286_s6 = scalar_lea.hbm %s1285_s30, 8  ;;  %p1291_p3 = scmp.lt.s32.totalorder %s1285_s30, %s1525_s5 }
  0x39   : > { %v1131_v51 = vld [vmem:[#allocation5 + $0x48] sm:$0xff]  ;;  %v1130_v52 = vld [vmem:[#allocation5 + $0x40] sm:$0xff]  ;;  %v1145_v53 = vld [vmem:[%s1524_s4 + $0x38] sm:$0xff]  ;;  %p1287_p0 = scmp.ne.s32.totalorder %s1285_s30, %s1286_s6  ;;  %p1292_p4 = scmp.lt.s32.totalorder %s1290_s8, %s1286_s6 }
  0x3a   : > { %469 = vmatpush.bf16.msra.mxu0 %v872_v16  ;;  %v1144_v54 = vld [vmem:[%s1524_s4 + $0x30] sm:$0xff]  ;;  %v1143_v55 = vld [vmem:[%s1524_s4 + $0x28] sm:$0xff]  ;;  %v290_v56 = vld [vmem:[%s1522_s2] sm:$0x3] }
  0x3b   : > { %482 = vmatpush.bf16.msra.mxu1 %v936_v18  ;;  %495 = vmatpush.bf16.msra.mxu2 %v876_v19  ;;  %v1142_v57 = vld [vmem:[%s1524_s4 + $0x20] sm:$0xff]  ;;  %v292_v58 = vperm.slane %v290_v56, 0  ;;  %v1141_v59 = vld [vmem:[%s1524_s4 + $0x18] sm:$0xff]  ;;  %v293_v0 = vperm.slane %v290_v56, 1  ;;  %v1140_v13 = vld [vmem:[%s1524_s4 + $0x10] sm:$0xff]  ;;  %p1288_p1 = pnand %p1287_p0, %p1416_p5  ;;  %p1293_p7 = por %p1292_p4, %p1291_p3 }
  0x3c   : > { %508 = vmatpush.bf16.msra.mxu3 %v940_v23  ;;  %v1139_v14 = vld [vmem:[%s1524_s4 + $0x8] sm:$0xff]  ;;  %v1138_v15 = vld [vmem:[%s1524_s4] sm:$0xff] }
  0x3d   : > { %p1289_p2 = pneg %p1288_p1 }
  0x3e   : > { %470 = vmatpush.bf16.msra.mxu0 %v864_v30 }
  0x3f   : > { %483 = vmatpush.bf16.msra.mxu1 %v928_v32  ;;  %496 = vmatpush.bf16.msra.mxu2 %v868_v33  ;;  %p1294_p8 = pnand %p1293_p7, %p1289_p2 }
  0x40   : > { %509 = vmatpush.bf16.msra.mxu3 %v932_v34 }
  0x41   : > { %471 = vmatmul.bf16.vlgmr.msra.gmra.mxu0 %v299_v36 }
  0x42   : > { %647 = vmatpush.bf16.msrb.mxu0 %v1129_v35  ;;  %484 = vmatmul.bf16.vlgmr.msra.gmra.mxu1 %v300_v38 }
  0x43   : > { %660 = vmatpush.bf16.msrb.mxu1 %v1137_v37  ;;  %497 = vmatmul.bf16.vlgmr.msra.gmra.mxu2 %v299_v36 }
  0x44   : > { %510 = vmatmul.bf16.vlgmr.msra.gmra.mxu3 %v300_v38  ;;  %739 = vmatpush.bf16.msrb.mxu2 %v1145_v53 }
  0x46   : > { %648 = vmatpush.bf16.msrb.mxu0 %v1128_v39 }
  0x47   : > { %661 = vmatpush.bf16.msrb.mxu1 %v1136_v40 }
  0x48   : > { %740 = vmatpush.bf16.msrb.mxu2 %v1144_v54 }
  0x4a   : > { %649 = vmatpush.bf16.msrb.mxu0 %v1127_v41 }
  0x4b   : > { %662 = vmatpush.bf16.msrb.mxu1 %v1135_v42 }
  0x4c   : > { %741 = vmatpush.bf16.msrb.mxu2 %v1143_v55 }
  0x4e   : > { %650 = vmatpush.bf16.msrb.mxu0 %v1126_v43 }
  0x4f   : > { %663 = vmatpush.bf16.msrb.mxu1 %v1134_v44 }
  0x50   : > { %742 = vmatpush.bf16.msrb.mxu2 %v1142_v57 }
  0x52   : > { %651 = vmatpush.bf16.msrb.mxu0 %v1125_v45 }
  0x53   : > { %664 = vmatpush.bf16.msrb.mxu1 %v1133_v47 }
  0x54   : > { %743 = vmatpush.bf16.msrb.mxu2 %v1141_v59 }
  0x56   : > { %652 = vmatpush.bf16.msrb.mxu0 %v1124_v46 }
  0x57   : > { %665 = vmatpush.bf16.msrb.mxu1 %v1132_v49 }
  0x58   : > { %744 = vmatpush.bf16.msrb.mxu2 %v1140_v13 }
  0x5a   : > { %653 = vmatpush.bf16.msrb.mxu0 %v1123_v48 }
  0x5b   : > { %666 = vmatpush.bf16.msrb.mxu1 %v1131_v51 }
  0x5c   : > { %745 = vmatpush.bf16.msrb.mxu2 %v1139_v14 }
  0x5e   : > { %654 = vmatpush.bf16.msrb.mxu0 %v1122_v50 }
  0x5f   : > { %667 = vmatpush.bf16.msrb.mxu1 %v1130_v52 }
  0x60   : > { %746 = vmatpush.bf16.msrb.mxu2 %v1138_v15 }
  0xbe   : > { %v472_v60 = vpop.f32.mrf.mxu0 }
  0xbf   : > { %v473_v61 = vadd.f32 %v472_v60, %v292_v58  ;;  %v485_v62 = vpop.f32.mrf.mxu1 }
  0xc1   : > { %v486_v63 = vadd.f32 %v485_v62, %v473_v61 }
  0xc3   : > { %v515_v1 = vmax.f32 %v486_v63, 0.0 }
  0xc5   : > { %v517_v2 = vpack.c.bf16 %v515_v1, %v515_v1 }
  0xc6   : > { %v498_v3 = vpop.f32.mrf.mxu2  ;;  %v474_v6 = vpop.f32.mrf.mxu0 }
  0xc7   : > { %v499_v4 = vadd.f32 %v498_v3, %v293_v0  ;;  %v511_v5 = vpop.f32.mrf.mxu3  ;;  %v487_v7 = vpop.f32.mrf.mxu1  ;;  %655 = vmatmul.bf16.vlgmr.msrb.gmra.mxu0 %v517_v2 }
  0xc9   : > { %v512_v8 = vadd.f32 %v511_v5, %v499_v4 }
  0xcb   : > { %v516_v9 = vmax.f32 %v512_v8, 0.0 }
  0xcd   : > { %v518_v10 = vpack.c.bf16 %v516_v9, %v516_v9 }
  0xce   : > { %v500_v11 = vpop.f32.mrf.mxu2 }
  0xcf   : > { %v513_v12 = vpop.f32.mrf.mxu3  ;;  %668 = vmatmul.bf16.vlgmr.msrb.gmra.mxu1 %v518_v10 }
 0x144   : > { %v656_v16 = vpop.f32.mrf.mxu0 }
 0x14c   : > { %v669_v17 = vpop.f32.mrf.mxu1  ;;  %v658_v19 = vpop.f32.mrf.mxu0 }
 0x14d   : > { %v670_v18 = vadd.f32 %v669_v17, %v656_v16 }
 0x14f   : > { %v673_v20 = vmax.f32 %v670_v18, 0.0 }
 0x151   : > { %v674_v21 = vpack.c.bf16 %v673_v20, %v673_v20 }
 0x153   : > { %747 = vmatmul.bf16.vlgmr.msrb.gmra.mxu2 %v674_v21 }
 0x154   : > { %v671_v22 = vpop.f32.mrf.mxu1 }
 0x1d6   : > { %v748_v23 = vpop.f32.mrf.mxu2 }
 0x1d7   : > { %752 = vst [vmem:[%s251_s17] sm:$0xff] %v748_v23 }
 0x1d8   : > { %1297 = shalt.err (!%p1294_p8)
}
 0x1d9   : > { %1154 = dma.vmem_to_hbm [thread:$0]  (%p1416_p5), %s767_s23, 128, %s769_s25, %s754_s26  }
 0x1de   : > { %v750_v24 = vpop.f32.mrf.mxu2 }
 0x1df PF: > { %p1171_p9 = scmp.ge.s32.totalorder %s1340_s21, 2  ;;  %s780_s11 = sand.u32 1, %s1328_s18  }
 0x1e0   : > { %s781_s12 = scalar_lea.sflag [#allocation4], %s780_s11 }
 0x1e1   : > { %p1164_p10 = pnand %p1171_p9, %p1420_p6 }
 0x1e3   : > { %p1165_p11 = pneg %p1164_p10 }
 0x1e5   : > { %1323 = dma.done.wait (%p1165_p11), %s781_s12, 128  }
 0x1e6   : > { %1325 = vsyncadd (%p1165_p11), %s781_s12, 4294967168  ;;  %p17_p12 = scmp.ge.s32.totalorder %s1403_s24, 4   ;;  %s1529_s18 = smov %s1332_s19 }
 0x1e7   : > { %s1530_s19 = smov %s1336_s20  ;;  %s1531_s20 = smov %s1414_s27 }
 0x1e8   : > { %s1532_s21 = smov %s1403_s24  ;;  %19 = sbr.rel (!%p17_p12) target bundleno = 5 (0x5), region = 84 }
 0x1ed   :  { %787 = vsyncpa [#allocation3], 1 }
 0x1ee   :  { %789 = vsyncpa [#allocation3 + $0x1], 1 }
 0x1ef   :  { %790 = vsyncpa [#allocation6], 1 }
 0x1f0   :  { %791 = vsyncpa [#allocation4], 1 }
 0x1f1   :  { %793 = vsyncpa [#allocation4 + $0x1], 1 }

</bundles_post_ra>
